<compile_context>
chip_gen: v5e
topology: v5e:2x2
jax: 0.10.0
libtpu: 0.0.40
codegen_flags: <defaults>
</compile_context>

<pallas_src>
import functools

import jax
import jax.numpy as jnp
from jax.experimental import pallas as pl
from jax.experimental.pallas import tpu as pltpu

EMBEDDING_DIM = 10
HIDDEN_DIM = EMBEDDING_DIM * 5   # 50
DEFAULT_TILE_N = 8192            # rows per grid step (multiple of 8)


def _round_up(x, m):
    return ((x + m - 1) // m) * m


def setnet_kernel(x_ref, w1_ref, b1_ref, w2_ref, b2_ref, o_ref):
    # One (TILE_N, 10) row-block per grid step; weights/biases are VMEM-resident
    # across steps (constant index_maps).  Both matmuls + sigmoid fused.
    x = x_ref[...]                                                   # (T, 10)
    b1 = b1_ref[...]                                                 # (1, 50)
    b2 = b2_ref[...]                                                 # (1, 10)

    h = jnp.dot(x, w1_ref[...], preferred_element_type=jnp.float32)  # MXU
    h = h + b1                                                       # VPU broadcast
    # sigmoid(h) == 0.5*tanh(0.5*h) + 0.5  -> single EUP push per vreg.
    h = 0.5 * jnp.tanh(0.5 * h) + 0.5

    o = jnp.dot(h, w2_ref[...], preferred_element_type=jnp.float32)  # MXU
    o = o + b2
    o_ref[...] = o.astype(o_ref.dtype)                               # (T, 10) store


@functools.partial(jax.jit, static_argnames=("tile_n",))
def setnet_forward(x, w1, b1, w2, b2, tile_n=DEFAULT_TILE_N):
    n, _ = x.shape

    # Validate tile: multiple of 8, >= 8, and no bigger than the (8-rounded)
    # problem size.  The ragged tail (n % tile_n != 0) is handled by Pallas'
    # boundary-block masking -- no padding or slicing passes needed.
    tile_n = max(8, (int(tile_n) // 8) * 8)
    tile_n = min(tile_n, _round_up(n, 8))

    grid = (pl.cdiv(n, tile_n),)

    flops = 2 * n * (EMBEDDING_DIM * HIDDEN_DIM + HIDDEN_DIM * EMBEDDING_DIM)
    bytes_accessed = (
        n * EMBEDDING_DIM * 4            # x in
        + n * EMBEDDING_DIM * 4          # out
        + (EMBEDDING_DIM * HIDDEN_DIM + HIDDEN_DIM
           + HIDDEN_DIM * EMBEDDING_DIM + EMBEDDING_DIM) * 4  # params
    )

    out = pl.pallas_call(
        setnet_kernel,
        out_shape=jax.ShapeDtypeStruct((n, EMBEDDING_DIM), jnp.float32),
        grid=grid,
        in_specs=[
            pl.BlockSpec((tile_n, EMBEDDING_DIM), lambda i: (i, 0)),      # x: tiled over rows
            pl.BlockSpec((EMBEDDING_DIM, HIDDEN_DIM), lambda i: (0, 0)),  # W1: resident
            pl.BlockSpec((1, HIDDEN_DIM), lambda i: (0, 0)),              # b1: resident
            pl.BlockSpec((HIDDEN_DIM, EMBEDDING_DIM), lambda i: (0, 0)),  # W2: resident
            pl.BlockSpec((1, EMBEDDING_DIM), lambda i: (0, 0)),           # b2: resident
        ],
        out_specs=pl.BlockSpec((tile_n, EMBEDDING_DIM), lambda i: (i, 0)),
        compiler_params=pltpu.CompilerParams(
            dimension_semantics=("parallel",),      # rows independent
            vmem_limit_bytes=48 * 1024 * 1024,      # fits v7x 64 MiB, lifts v5e 16 MiB default
        ),
        cost_estimate=pl.CostEstimate(
            flops=flops,
            transcendentals=n * HIDDEN_DIM,
            bytes_accessed=bytes_accessed,
        ),
    )(x, w1, b1, w2, b2)

    return out


def init_params(key):
    """Deterministic init mimicking nn.Linear default (uniform +/- 1/sqrt(fan_in))."""
    k1, k2, k3, k4 = jax.random.split(key, 4)
    bound1 = 1.0 / (EMBEDDING_DIM ** 0.5)
    bound2 = 1.0 / (HIDDEN_DIM ** 0.5)
    # Stored as (in, out) so the kernel uses x @ W (== PyTorch's x @ W.T).
    w1 = jax.random.uniform(k1, (EMBEDDING_DIM, HIDDEN_DIM), jnp.float32,
                            minval=-bound1, maxval=bound1)
    b1 = jax.random.uniform(k2, (1, HIDDEN_DIM), jnp.float32,
                            minval=-bound1, maxval=bound1)
    w2 = jax.random.uniform(k3, (HIDDEN_DIM, EMBEDDING_DIM), jnp.float32,
                            minval=-bound2, maxval=bound2)
    b2 = jax.random.uniform(k4, (1, EMBEDDING_DIM), jnp.float32,
                            minval=-bound2, maxval=bound2)
    return w1, b1, w2, b2


def setnet_reference(x, w1, b1, w2, b2):
    h = jax.nn.sigmoid(x @ w1 + b1)
    return h @ w2 + b2


if __name__ == "__main__":
    key = jax.random.PRNGKey(0)
    k_params, k_x1, k_x2 = jax.random.split(key, 3)
    w1, b1, w2, b2 = init_params(k_params)

    # Small batch of set elements, each a 10-dim embedding.
    x_small = jax.random.normal(k_x1, (8, EMBEDDING_DIM), dtype=jnp.float32)
    out_small = jax.block_until_ready(setnet_forward(x_small, w1, b1, w2, b2))
    ref_small = setnet_reference(x_small, w1, b1, w2, b2)
    assert out_small.shape == (8, EMBEDDING_DIM)
    assert jnp.allclose(out_small, ref_small, atol=1e-5, rtol=1e-5)

    # Exercise the multi-step grid + ragged-tail path (N not a tile multiple).
    x_big = jax.random.normal(k_x2, (300, EMBEDDING_DIM), dtype=jnp.float32)
    out_big = jax.block_until_ready(setnet_forward(x_big, w1, b1, w2, b2, tile_n=64))
    ref_big = setnet_reference(x_big, w1, b1, w2, b2)
    assert out_big.shape == (300, EMBEDDING_DIM)
    assert jnp.allclose(out_big, ref_big, atol=1e-5, rtol=1e-5)

    print("KERNEL_OK")
</pallas_src>

<mosaic_0001>
module attributes {stable_mosaic.version = 11 : i64} {
  func.func @setnet_kernel(%arg0: i32, %arg1: memref<8x10xf32, #tpu.memory_space<vmem>>, %arg2: memref<10x50xf32, #tpu.memory_space<vmem>>, %arg3: memref<1x50xf32, #tpu.memory_space<vmem>>, %arg4: memref<50x10xf32, #tpu.memory_space<vmem>>, %arg5: memref<1x10xf32, #tpu.memory_space<vmem>>, %arg6: memref<8x10xf32, #tpu.memory_space<vmem>>) attributes {dimension_semantics = [#tpu.dimension_semantics<parallel>], iteration_bounds = array<i64: 1>, scalar_prefetch = 0 : i64, scratch_operands = 0 : i64, tpu.core_type = #tpu.core_type<tc>, window_params = [{transform_indices = @transform_0, window_bounds = array<i64: 8, 10>}, {pipeline_mode = #tpu.pipeline_mode<synchronous>, transform_indices = @transform_1, window_bounds = array<i64: 10, 50>}, {pipeline_mode = #tpu.pipeline_mode<synchronous>, transform_indices = @transform_2, window_bounds = array<i64: 1, 50>}, {pipeline_mode = #tpu.pipeline_mode<synchronous>, transform_indices = @transform_3, window_bounds = array<i64: 50, 10>}, {pipeline_mode = #tpu.pipeline_mode<synchronous>, transform_indices = @transform_4, window_bounds = array<i64: 1, 10>}, {transform_indices = @transform_5, window_bounds = array<i64: 8, 10>}]} {
    %c0 = arith.constant 0 : index
    %c0_0 = arith.constant 0 : index
    %0 = vector.load %arg1[%c0, %c0_0] : memref<8x10xf32, #tpu.memory_space<vmem>>, vector<8x10xf32>
    %c0_1 = arith.constant 0 : index
    %c0_2 = arith.constant 0 : index
    %1 = vector.load %arg3[%c0_1, %c0_2] : memref<1x50xf32, #tpu.memory_space<vmem>>, vector<1x50xf32>
    %c0_3 = arith.constant 0 : index
    %c0_4 = arith.constant 0 : index
    %2 = vector.load %arg5[%c0_3, %c0_4] : memref<1x10xf32, #tpu.memory_space<vmem>>, vector<1x10xf32>
    %c0_5 = arith.constant 0 : index
    %c0_6 = arith.constant 0 : index
    %3 = vector.load %arg2[%c0_5, %c0_6] : memref<10x50xf32, #tpu.memory_space<vmem>>, vector<10x50xf32>
    %cst = arith.constant dense<0.000000e+00> : vector<8x50xf32>
    %4 = tpu.matmul %0, %3, %cst {dimension_numbers = #tpu.dot_dimension_numbers<[1], [0], [0], [1], [0, 0, 1, 1], [], []>} : vector<8x10xf32>, vector<10x50xf32>, vector<8x50xf32> -> vector<8x50xf32>
    %5 = vector.broadcast %1 : vector<1x50xf32> to vector<8x50xf32>
    %6 = arith.addf %4, %5 : vector<8x50xf32>
    %cst_7 = arith.constant 5.000000e-01 : f32
    %7 = vector.broadcast %cst_7 : f32 to vector<8x50xf32>
    %8 = arith.mulf %7, %6 : vector<8x50xf32>
    %9 = math.tanh %8 : vector<8x50xf32>
    %cst_8 = arith.constant 5.000000e-01 : f32
    %10 = vector.broadcast %cst_8 : f32 to vector<8x50xf32>
    %11 = arith.mulf %10, %9 : vector<8x50xf32>
    %cst_9 = arith.constant 5.000000e-01 : f32
    %12 = vector.broadcast %cst_9 : f32 to vector<8x50xf32>
    %13 = arith.addf %11, %12 : vector<8x50xf32>
    %c0_10 = arith.constant 0 : index
    %c0_11 = arith.constant 0 : index
    %14 = vector.load %arg4[%c0_10, %c0_11] : memref<50x10xf32, #tpu.memory_space<vmem>>, vector<50x10xf32>
    %cst_12 = arith.constant dense<0.000000e+00> : vector<8x10xf32>
    %15 = tpu.matmul %13, %14, %cst_12 {dimension_numbers = #tpu.dot_dimension_numbers<[1], [0], [0], [1], [0, 0, 1, 1], [], []>} : vector<8x50xf32>, vector<50x10xf32>, vector<8x10xf32> -> vector<8x10xf32>
    %16 = vector.broadcast %2 : vector<1x10xf32> to vector<8x10xf32>
    %17 = arith.addf %15, %16 : vector<8x10xf32>
    %c0_13 = arith.constant 0 : index
    %c0_14 = arith.constant 0 : index
    %18 = vector.load %arg6[%c0_13, %c0_14] : memref<8x10xf32, #tpu.memory_space<vmem>>, vector<8x10xf32>
    tpu.vector_store %arg6[%c0_13, %c0_14], %17 {strides = array<i32>} : memref<8x10xf32, #tpu.memory_space<vmem>>, vector<8x10xf32>,
    return
  }
  func.func @transform_0(%arg0: i32) -> (i32, i32) {
    %c0_i32 = arith.constant 0 : i32
    %c0_i32_0 = arith.constant 0 : i32
    return %arg0, %c0_i32 : i32, i32
  }
  func.func @transform_1(%arg0: i32) -> (i32, i32) {
    %c0_i32 = arith.constant 0 : i32
    %c0_i32_0 = arith.constant 0 : i32
    %c0_i32_1 = arith.constant 0 : i32
    return %c0_i32, %c0_i32_0 : i32, i32
  }
  func.func @transform_2(%arg0: i32) -> (i32, i32) {
    %c0_i32 = arith.constant 0 : i32
    %c0_i32_0 = arith.constant 0 : i32
    %c0_i32_1 = arith.constant 0 : i32
    return %c0_i32, %c0_i32_0 : i32, i32
  }
  func.func @transform_3(%arg0: i32) -> (i32, i32) {
    %c0_i32 = arith.constant 0 : i32
    %c0_i32_0 = arith.constant 0 : i32
    %c0_i32_1 = arith.constant 0 : i32
    return %c0_i32, %c0_i32_0 : i32, i32
  }
  func.func @transform_4(%arg0: i32) -> (i32, i32) {
    %c0_i32 = arith.constant 0 : i32
    %c0_i32_0 = arith.constant 0 : i32
    %c0_i32_1 = arith.constant 0 : i32
    return %c0_i32, %c0_i32_0 : i32, i32
  }
  func.func @transform_5(%arg0: i32) -> (i32, i32) {
    %c0_i32 = arith.constant 0 : i32
    %c0_i32_0 = arith.constant 0 : i32
    return %arg0, %c0_i32 : i32, i32
  }
}

</mosaic_0001>

<bundles_post_ra>
// kernel: setnet_forward.1
= control target key start
LH: loop header
LB: loop body
LE: loop exit
PB: predicated region body
PF: predicated region fallthrough
CT: control target
= control target key end

     0   :  { %vm33_vm0 = vcmask 1041408   ;;  %vm29_vm1 = vcmask 80896   ;;  %s222_s0 = inlined_call_operand.vmem [shape: f32[8,10], index: 0, kind: input, shape index: {}]   ;;  %s223_s1 = inlined_call_operand.vmem [shape: f32[10,50], index: 1, kind: input, shape index: {}]   ;;  %s224_s2 = inlined_call_operand.vmem [shape: f32[1,50], index: 2, kind: input, shape index: {}]   ;;  %s225_s3 = inlined_call_operand.vmem [shape: f32[50,10], index: 3, kind: input, shape index: {}]   ;;  %s226_s4 = inlined_call_operand.vmem [shape: f32[1,10], index: 4, kind: input, shape index: {}]   ;;  %s227_s5 = inlined_call_operand.hbm [shape: f32[8,10], index: 5, kind: output, shape index: {}]  }
   0x1   :  { %v25_v0 = vld [vmem:[%s223_s1 + $0x8] sm:$0x3]  ;;  %v24_v1 = vld [vmem:[%s223_s1] sm:$0xff] }
   0x2   :  { %115 = vmatpush.msk.msra.mxu0 %vm33_vm0, %v25_v0  ;;  %v21_v2 = vld [vmem:[%s222_s0] sm:$0xff] }
   0x3   :  { %10 = vsyncpa [#allocation3], 0  ;;  %v67_v3 = vld [vmem:[%s225_s3 + $0x30] sm:$0x3]  ;;  %v66_v4 = vld [vmem:[%s225_s3 + $0x28] sm:$0xff]  ;;  %vm71_vm2 = vcmask 408576  }
   0x4   :  { %52 = vmatpush.msra.mxu0 %v24_v1  ;;  %117 = vmatpush.msk.msra.mxu1 %vm33_vm0, %v67_v3  ;;  %v65_v5 = vld [vmem:[%s225_s3 + $0x20] sm:$0xff]  ;;  %v64_v6 = vld [vmem:[%s225_s3 + $0x18] sm:$0xff]  ;;  %v63_v7 = vld [vmem:[%s225_s3 + $0x10] sm:$0xff]  ;;  %s150_s15 = smov [#allocation2]   ;;  %s106_s18 = sshll.u32 %s227_s5, 4  ;;  %s107_s18 = int_to_ptr.hbm [resolvable:$true] %s106_s18 }
   0x5   :  { %116 = vmatmul.msk.f32.vlgmr.msra.gmra.mxu0 %vm29_vm1, %v21_v2  ;;  %v62_v8 = vld [vmem:[%s225_s3 + $0x8] sm:$0xff]  ;;  %v61_v9 = vld [vmem:[%s225_s3] sm:$0xff]  ;;  %s104_s3 = sshll.u32 %s150_s15, 4  ;;  %s105_s3 = int_to_ptr.vmem [resolvable:$true] %s104_s3 }
   0x6   :  { %88 = vmatpush.msra.mxu1 %v66_v4  ;;  %v120_v10 = vld [vmem:[%s224_s2] ss:$0 sm:$0xff] }
   0x7   :  { %v121_v17 = vld [vmem:[%s226_s4] ss:$0 sm:$0xff] }
   0x8   :  { %89 = vmatpush.msra.mxu1 %v65_v5 }
   0xa   :  { %90 = vmatpush.msra.mxu1 %v64_v6 }
   0xc   :  { %91 = vmatpush.msra.mxu1 %v63_v7 }
   0xe   :  { %92 = vmatpush.msra.mxu1 %v62_v8 }
  0x10   :  { %93 = vmatpush.msra.mxu1 %v61_v9 }
  0x82   :  { %v54_v11 = vpop.f32.mrf.mxu0 }
  0x83   :  { %v55_v12 = vadd.f32 %v120_v10, %v54_v11 }
  0x85   :  { %v57_v13 = vmul.f32 0.5, %v55_v12 }
  0x87   :  { %122 = vtanh.f32 %v57_v13 }
  0x8d   :  { %v123_v14 = vpop.eup %122 }
  0x8e   :  { %v59_v15 = vmul.f32 0.5, %v123_v14 }
  0x90   :  { %v60_v16 = vadd.f32 0.5, %v59_v15 }
  0x92   :  { %118 = vmatmul.msk.f32.vlgmr.msra.gmra.mxu1 %vm71_vm2, %v60_v16 }
 0x10f   :  { %v95_v18 = vpop.f32.mrf.mxu1 }
 0x110   :  { %v96_v19 = vadd.f32 %v121_v17, %v95_v18 }
 0x112   :  { %98 = vst.msk [vmem:[#allocation2] sm:$0xff] %vm29_vm1, %v96_v19 }
 0x113   :  { %109 = dma.vmem_to_hbm [thread:$0]  %s105_s3, 128, %s107_s18, [#allocation3]  }
 0x114   :  { %148 = dma.done.wait [#allocation3], 128  }
 0x115   :  { %149 = vsyncadd [#allocation3], 4294967168 }
 0x116   :  { %114 = vsyncpa [#allocation3], 1 }

</bundles_post_ra>
